<compile_context>
chip_gen: v7x
topology: tpu7x:2x2x1
jax: 0.10.0
libtpu: 0.0.40
codegen_flags: <defaults>
</compile_context>

<pallas_src>
import functools

import jax
import jax.numpy as jnp
from jax import lax
from jax.experimental import pallas as pl
from jax.experimental.pallas import tpu as pltpu

EPS = 1e-5  # nn.BatchNorm1d default


def _round_up(x, m):
    return ((x + m - 1) // m) * m


def _vmem_budget_bytes():
    try:
        cap = int(pltpu.get_tpu_info().vmem_capacity_bytes)
    except Exception:
        cap = 64 * 1024 * 1024  # assume the smallest (v7x) if the query fails
    # Stay well under physical VMEM: ~48 MiB on v7x (64 MiB), 96 MiB on v5e/v6e (128 MiB).
    return min((cap // 4) * 3, 96 * 1024 * 1024)


def fc_project_kernel(x_ref, w_ref, o_ref, *, n_real, tk, x_resident):
    # Grid = (out_dim tiles [parallel], in_dim tiles [arbitrary / reduction]).
    #   x_ref: (N_pad, K_pad) if resident else (N_pad, tk)   [compute dtype]
    #   w_ref: (tn, tk)  nn.Linear layout, contracted on its last dim (in-MXU transpose)
    #   o_ref: (N_pad, tn) f32 -- doubles as the accumulator (resident across k)
    k = pl.program_id(1)

    if x_resident:
        start = pl.multiple_of(k * tk, tk)
        x_blk = x_ref[:, pl.ds(start, tk)]
    else:
        x_blk = x_ref[...]

    partial = lax.dot_general(
        x_blk, w_ref[...],
        dimension_numbers=(((1,), (1,)), ((), ())),
        preferred_element_type=jnp.float32,
    )

    @pl.when(k == 0)
    def _init():
        o_ref[...] = partial

    @pl.when(k != 0)
    def _acc():
        o_ref[...] += partial

    @pl.when(k == pl.num_programs(1) - 1)
    def _finalize():
        y = o_ref[...]  # (N_pad, tn) f32

        # NonLinear: non_linear=None -> nn.Identity.
        # TODO(synk): plug the chosen activation in here if non_linear is not None.

        # BatchNorm1d(affine=False), training-mode batch stats (biased variance),
        # centered variance with padded batch rows masked out of the stats.
        inv_n = jnp.float32(1.0 / n_real)
        mean = jnp.sum(y, axis=0, keepdims=True) * inv_n  # padded rows are exact zeros
        row = lax.broadcasted_iota(jnp.int32, y.shape, 0)
        yc = jnp.where(row < n_real, y - mean, 0.0)
        var = jnp.sum(yc * yc, axis=0, keepdims=True) * inv_n
        o_ref[...] = (yc * lax.rsqrt(var + EPS)).astype(o_ref.dtype)

        # Dropout: dropout=None -> nn.Identity.
        # TODO(synk): optional bf16 output writeback (needs a separate f32 accumulator).


def fc_project(x, w, *, tn=512, tk=1024, compute_dtype=jnp.bfloat16):
    """Fused FCProject forward (training-mode batch norm).

    x: (N, in_dim) activations.
    w: (out_dim, in_dim) nn.Linear weight (bias=False), PyTorch layout (no transpose).
    compute_dtype: MXU operand dtype (bf16 default); accumulation/epilogue stay f32.
    Returns (N, out_dim) float32.
    """
    n, in_dim = x.shape
    out_dim, in_dim_w = w.shape
    assert in_dim == in_dim_w, "weight / input in_dim mismatch"

    op_bytes = jnp.dtype(compute_dtype).itemsize
    n_pad = _round_up(n, 32 // op_bytes)  # sublane pack: 8 (f32) / 16 (bf16) / 32 (i8)

    tn = min(tn, _round_up(out_dim, 128))
    tk = min(tk, _round_up(in_dim, 128))

    # v7x has 2 TensorCores: give the "parallel" out_dim axis >= 2 tiles whenever the
    # extra tile is not pure padding (out_dim > 128).
    if _round_up(out_dim, 128) > 128 and _round_up(out_dim, tn) == tn:
        tn = _round_up(-(-out_dim // 2), 128)

    budget = _vmem_budget_bytes()

    def streamed_footprint(tn_, tk_):
        return (2 * n_pad * tn_ * 4            # double-buffered f32 output/accumulator
                + 2 * tk_ * tn_ * op_bytes     # double-buffered W tile
                + 2 * n_pad * tk_ * op_bytes)  # double-buffered x tile

    # Shrink tiles (128-aligned) until the streamed-x footprint fits the VMEM budget.
    while streamed_footprint(tn, tk) > budget and (tk > 128 or tn > 128):
        if tk >= tn and tk > 128:
            tk = max(128, _round_up(tk // 2, 128))
        else:
            tn = max(128, _round_up(tn // 2, 128))
    # TODO(synk): batch-tiled stats path (carried s1/s2 across a batch grid axis) once
    # n_pad alone exceeds the VMEM budget; the current design keeps the batch resident.

    m_pad = _round_up(out_dim, tn)
    k_pad = _round_up(in_dim, tk)
    m_tiles = m_pad // tn
    k_tiles = k_pad // tk

    # Keep x fully resident in VMEM (one DMA total) when it pays off and fits.
    resident_footprint = (2 * n_pad * tn * 4
                          + 2 * tk * tn * op_bytes
                          + 2 * n_pad * k_pad * op_bytes)
    x_resident = (m_tiles > 1) and (resident_footprint <= budget)

    x_c = x.astype(compute_dtype)
    x_p = (x_c if (n_pad, k_pad) == x_c.shape
           else jnp.zeros((n_pad, k_pad), compute_dtype).at[:n, :in_dim].set(x_c))
    w_c = w.astype(compute_dtype)
    w_p = (w_c if (m_pad, k_pad) == w_c.shape
           else jnp.zeros((m_pad, k_pad), compute_dtype).at[:out_dim, :in_dim].set(w_c))

    if x_resident:
        x_spec = pl.BlockSpec((n_pad, k_pad), lambda j, k: (0, 0))
    else:
        x_spec = pl.BlockSpec((n_pad, tk), lambda j, k: (0, k))

    kernel = functools.partial(
        fc_project_kernel, n_real=n, tk=tk, x_resident=x_resident)

    out = pl.pallas_call(
        kernel,
        out_shape=jax.ShapeDtypeStruct((n_pad, m_pad), jnp.float32),
        grid_spec=pltpu.PrefetchScalarGridSpec(
            num_scalar_prefetch=0,
            grid=(m_tiles, k_tiles),
            in_specs=[
                x_spec,
                pl.BlockSpec((tn, tk), lambda j, k: (j, k)),  # W in (out_dim, in_dim) layout
            ],
            out_specs=pl.BlockSpec((n_pad, tn), lambda j, k: (0, j)),
        ),
        compiler_params=pltpu.CompilerParams(
            # out_dim tiles are independent (per-feature stats) -> parallel;
            # in_dim is the reduction axis -> arbitrary, last in the grid.
            dimension_semantics=("parallel", "arbitrary"),
            vmem_limit_bytes=budget,
        ),
    )(x_p, w_p)

    return out[:n, :out_dim]


def fc_project_ref(x, w):
    y = x @ w.T
    mean = jnp.mean(y, axis=0, keepdims=True)
    var = jnp.mean((y - mean) ** 2, axis=0, keepdims=True)
    return (y - mean) / jnp.sqrt(var + EPS)


if __name__ == "__main__":
    key = jax.random.PRNGKey(0)
    kx, kw = jax.random.split(key)

    batch, in_dim, out_dim = 8, 32, 16

    x = jax.random.normal(kx, (batch, in_dim), dtype=jnp.float32)
    # nn.Linear weight shape: (out_dim, in_dim), kaiming-uniform-ish init.
    bound = 1.0 / (in_dim ** 0.5)
    w = jax.random.uniform(
        kw, (out_dim, in_dim), dtype=jnp.float32, minval=-bound, maxval=bound
    )

    ref = fc_project_ref(x, w)

    # Default path: bf16 MXU operands, f32 accumulation + f32 BN epilogue.
    out_bf16 = jax.block_until_ready(fc_project(x, w))
    assert out_bf16.shape == (batch, out_dim)
    assert jnp.allclose(out_bf16, ref, atol=1e-1, rtol=1e-1), "bf16-operand path mismatch"

    # f32 operands: tight check against the pure-JAX reference.
    out_f32 = jax.block_until_ready(fc_project(x, w, compute_dtype=jnp.float32))
    assert out_f32.shape == (batch, out_dim)
    assert jnp.allclose(out_f32, ref, atol=1e-4, rtol=1e-4), "f32 path mismatch vs reference"

    print("KERNEL_OK")
</pallas_src>

<mosaic_0001>
module attributes {stable_mosaic.version = 11 : i64} {
  func.func @fc_project_kernel(%arg0: i32, %arg1: i32, %arg2: memref<16x128xbf16, #tpu.memory_space<vmem>>, %arg3: memref<128x128xbf16, #tpu.memory_space<vmem>>, %arg4: memref<16x128xf32, #tpu.memory_space<vmem>>) attributes {dimension_semantics = [#tpu.dimension_semantics<parallel>, #tpu.dimension_semantics<arbitrary>], iteration_bounds = array<i64: 1, 1>, scalar_prefetch = 0 : i64, scratch_operands = 0 : i64, tpu.core_type = #tpu.core_type<tc>, window_params = [{transform_indices = @transform_0, window_bounds = array<i64: 16, 128>}, {transform_indices = @transform_1, window_bounds = array<i64: 128, 128>}, {transform_indices = @transform_2, window_bounds = array<i64: 16, 128>}]} {
    %c0 = arith.constant 0 : index
    %c0_0 = arith.constant 0 : index
    %0 = vector.load %arg2[%c0, %c0_0] : memref<16x128xbf16, #tpu.memory_space<vmem>>, vector<16x128xbf16>
    %c0_1 = arith.constant 0 : index
    %c0_2 = arith.constant 0 : index
    %1 = vector.load %arg3[%c0_1, %c0_2] : memref<128x128xbf16, #tpu.memory_space<vmem>>, vector<128x128xbf16>
    %cst = arith.constant dense<0.000000e+00> : vector<16x128xf32>
    %2 = tpu.matmul %0, %1, %cst {dimension_numbers = #tpu.dot_dimension_numbers<[1], [1], [0], [0], [0, 0, 1, 0], [], []>} : vector<16x128xbf16>, vector<128x128xbf16>, vector<16x128xf32> -> vector<16x128xf32>
    %c0_i32 = arith.constant 0 : i32
    %3 = arith.cmpi eq, %arg1, %c0_i32 : i32
    %4 = arith.extui %3 : i1 to i32
    %c0_i32_3 = arith.constant 0 : i32
    %5 = arith.cmpi ne, %4, %c0_i32_3 : i32
    scf.if %5 {
      %c0_8 = arith.constant 0 : index
      %c0_9 = arith.constant 0 : index
      %12 = vector.load %arg4[%c0_8, %c0_9] : memref<16x128xf32, #tpu.memory_space<vmem>>, vector<16x128xf32>
      tpu.vector_store %arg4[%c0_8, %c0_9], %2 {strides = array<i32>} : memref<16x128xf32, #tpu.memory_space<vmem>>, vector<16x128xf32>,
    } else {
    }
    %c0_i32_4 = arith.constant 0 : i32
    %6 = arith.cmpi ne, %arg1, %c0_i32_4 : i32
    %7 = arith.extui %6 : i1 to i32
    %c0_i32_5 = arith.constant 0 : i32
    %8 = arith.cmpi ne, %7, %c0_i32_5 : i32
    scf.if %8 {
      %c0_8 = arith.constant 0 : index
      %c0_9 = arith.constant 0 : index
      %12 = vector.load %arg4[%c0_8, %c0_9] : memref<16x128xf32, #tpu.memory_space<vmem>>, vector<16x128xf32>
      %13 = arith.addf %12, %2 : vector<16x128xf32>
      %c0_10 = arith.constant 0 : index
      %c0_11 = arith.constant 0 : index
      %14 = vector.load %arg4[%c0_10, %c0_11] : memref<16x128xf32, #tpu.memory_space<vmem>>, vector<16x128xf32>
      tpu.vector_store %arg4[%c0_10, %c0_11], %13 {strides = array<i32>} : memref<16x128xf32, #tpu.memory_space<vmem>>, vector<16x128xf32>,
    } else {
    }
    %c0_i32_6 = arith.constant 0 : i32
    %9 = arith.cmpi eq, %arg1, %c0_i32_6 : i32
    %10 = arith.extui %9 : i1 to i32
    %c0_i32_7 = arith.constant 0 : i32
    %11 = arith.cmpi ne, %10, %c0_i32_7 : i32
    scf.if %11 {
      %c0_8 = arith.constant 0 : index
      %c0_9 = arith.constant 0 : index
      %12 = vector.load %arg4[%c0_8, %c0_9] : memref<16x128xf32, #tpu.memory_space<vmem>>, vector<16x128xf32>
      %cst_10 = arith.constant dense<0.000000e+00> : vector<128xf32>
      %13 = vector.multi_reduction <add>, %12, %cst_10 [0] : vector<16x128xf32> to vector<128xf32>
      %14 = vector.shape_cast %13 : vector<128xf32> to vector<1x128xf32>
      %cst_11 = arith.constant 1.250000e-01 : f32
      %15 = vector.broadcast %cst_11 : f32 to vector<1x128xf32>
      %16 = arith.mulf %14, %15 : vector<1x128xf32>
      %17 = tpu.iota {dimensions = array<i32: 0>} : vector<16x128xi32>
      %c8_i32 = arith.constant 8 : i32
      %18 = vector.broadcast %c8_i32 : i32 to vector<16x128xi32>
      %19 = arith.cmpi slt, %17, %18 : vector<16x128xi32>
      %20 = vector.broadcast %16 : vector<1x128xf32> to vector<16x128xf32>
      %21 = arith.subf %12, %20 : vector<16x128xf32>
      %cst_12 = arith.constant 0.000000e+00 : f32
      %22 = vector.broadcast %cst_12 : f32 to vector<16x128xf32>
      %23 = arith.select %19, %21, %22 : vector<16x128xi1>, vector<16x128xf32>
      %24 = arith.mulf %23, %23 : vector<16x128xf32>
      %cst_13 = arith.constant dense<0.000000e+00> : vector<128xf32>
      %25 = vector.multi_reduction <add>, %24, %cst_13 [0] : vector<16x128xf32> to vector<128xf32>
      %26 = vector.shape_cast %25 : vector<128xf32> to vector<1x128xf32>
      %cst_14 = arith.constant 1.250000e-01 : f32
      %27 = vector.broadcast %cst_14 : f32 to vector<1x128xf32>
      %28 = arith.mulf %26, %27 : vector<1x128xf32>
      %cst_15 = arith.constant 9.99999974E-6 : f32
      %29 = vector.broadcast %cst_15 : f32 to vector<1x128xf32>
      %30 = arith.addf %28, %29 : vector<1x128xf32>
      %31 = math.rsqrt %30 : vector<1x128xf32>
      %32 = vector.broadcast %31 : vector<1x128xf32> to vector<16x128xf32>
      %33 = arith.mulf %23, %32 : vector<16x128xf32>
      %c0_16 = arith.constant 0 : index
      %c0_17 = arith.constant 0 : index
      %34 = vector.load %arg4[%c0_16, %c0_17] : memref<16x128xf32, #tpu.memory_space<vmem>>, vector<16x128xf32>
      tpu.vector_store %arg4[%c0_16, %c0_17], %33 {strides = array<i32>} : memref<16x128xf32, #tpu.memory_space<vmem>>, vector<16x128xf32>,
    } else {
    }
    return
  }
  func.func @transform_0(%arg0: i32, %arg1: i32) -> (i32, i32) {
    %c0_i32 = arith.constant 0 : i32
    %c0_i32_0 = arith.constant 0 : i32
    return %c0_i32, %arg1 : i32, i32
  }
  func.func @transform_1(%arg0: i32, %arg1: i32) -> (i32, i32) {
    %c0_i32 = arith.constant 0 : i32
    return %arg0, %arg1 : i32, i32
  }
  func.func @transform_2(%arg0: i32, %arg1: i32) -> (i32, i32) {
    %c0_i32 = arith.constant 0 : i32
    %c0_i32_0 = arith.constant 0 : i32
    return %c0_i32, %arg0 : i32, i32
  }
}

</mosaic_0001>

<bundles_post_ra>
// kernel: tpu_custom_call.1
= control target key start
LH: loop header
LB: loop body
LE: loop exit
PB: predicated region body
PF: predicated region fallthrough
CT: control target
= control target key end

     0   :  { %7 = vsyncpa [#allocation3], 0  ;;  %s416_s0 = inlined_call_operand.hbm [shape: bf16[16,128], index: 0, kind: input, shape index: {}]   ;;  %s417_s1 = inlined_call_operand.hbm [shape: bf16[128,128], index: 1, kind: input, shape index: {}]   ;;  %s418_s2 = inlined_call_operand.hbm [shape: f32[16,128], index: 2, kind: output, shape index: {}]  }
   0x1   :  { %8 = vsyncpa [#allocation6], 0 }
   0x2   :  { %9 = vsyncpa [#allocation4], 0  ;;  %s356_s9 = smov [#allocation2]   ;;  %s284_s13 = scalar_lea.hbm %s416_s0, 128 }
   0x3   :  { %s15_s10 = sshll.u32 %s356_s9, 4  ;;  %p285_p0 = scmp.ne.s32.totalorder %s416_s0, %s284_s13  ;;  %s16_s10 = int_to_ptr.vmem [resolvable:$true] %s15_s10 }
   0x4   :  { %p288_p1 = scmp.lt.u32.totalorder %s284_s13, %s416_s0 }
   0x6   :  { %p290_p2 = pnand %p288_p1, %p285_p0 }
   0x8   :  { %293 = shalt.err (!%p290_p2)
}
   0x9   :  { %s294_s18 = scalar_lea.vmem %s16_s10, 128  ;;  %p299_p4 = scmp.lt.s32.totalorder %s16_s10, %s16_s10 }
   0xa   :  { %p295_p3 = scmp.ne.s32.totalorder %s16_s10, %s294_s18  ;;  %p300_p5 = scmp.lt.s32.totalorder %s294_s18, %s294_s18 }
   0xc   :  { %p301_p6 = por %p300_p5, %p299_p4 }
   0xe   :  { %p302_p7 = pnand %p301_p6, %p295_p3 }
  0x10   :  { %305 = shalt.err (!%p302_p7)
}
  0x11   :  { %s357_s19 = smov 64   ;;  %s358_s20 = smov 4  }
  0x12   :  { %21 = dma.hbm_to_vmem [thread:$0]  %s416_s0, 128, %s16_s10, [#allocation3], %s357_s19, %s357_s19, %s358_s20  }
  0x13   :  { %s359_s23 = smov [#allocation5]   ;;  %s306_s27 = scalar_lea.hbm %s417_s1, 1024 }
  0x14   :  { %s27_s24 = sshll.u32 %s359_s23, 4  ;;  %p307_p8 = scmp.ne.s32.totalorder %s417_s1, %s306_s27  ;;  %s28_s24 = int_to_ptr.vmem [resolvable:$true] %s27_s24 }
  0x15   :  { %p310_p9 = scmp.lt.u32.totalorder %s306_s27, %s417_s1 }
  0x17   :  { %p312_p10 = pnand %p310_p9, %p307_p8 }
  0x19   :  { %315 = shalt.err (!%p312_p10)
}
  0x1a   :  { %s316_s4 = scalar_lea.vmem %s28_s24, 1024  ;;  %p321_p12 = scmp.lt.s32.totalorder %s28_s24, %s28_s24 }
  0x1b   :  { %p317_p11 = scmp.ne.s32.totalorder %s28_s24, %s316_s4  ;;  %p322_p13 = scmp.lt.s32.totalorder %s316_s4, %s316_s4 }
  0x1d   :  { %p323_p0 = por %p322_p13, %p321_p12 }
  0x1f   :  { %p324_p1 = pnand %p323_p0, %p317_p11 }
  0x21   :  { %327 = shalt.err (!%p324_p1)
}
  0x22   :  { %33 = dma.hbm_to_vmem [thread:$0]  %s417_s1, 1024, %s28_s24, [#allocation6], %s357_s19, %s357_s19, %s358_s20  }
  0x23   :  { %350 = dma.done.wait [#allocation3], 128  }
  0x24   :  { %351 = vsyncadd [#allocation3], 4294967168 }
  0x25   :  { %352 = dma.done.wait [#allocation6], 1024  }
  0x26   :  { %353 = vsyncadd [#allocation6], 4294966272  ;;  %v360_v0 = vmov 0.0   ;;  %vm361_vm0 = vmmov 0   ;;  %v273_v1 = vld [vmem:[#allocation5] sm:$0xff]   ;;  %v274_v2 = vld [vmem:[#allocation5 + $0x8] sm:$0xff]  }
  0x27   :  { %244 = vmatprep.subr.bf16.mxu0 %v360_v0  ;;  %260 = vmatprep.mubr.msk.bf16.mxu0 %vm361_vm0, %v360_v0  ;;  %v275_v3 = vld [vmem:[#allocation5 + $0x10] sm:$0xff]   ;;  %v276_v4 = vld [vmem:[#allocation5 + $0x18] sm:$0xff]   ;;  %v277_v5 = vld [vmem:[#allocation5 + $0x20] sm:$0xff]   ;;  %s362_s1 = smov [#allocation7]  }
  0x28   :  { %245 = vmatpush3.bf16.xpose.msra.mxu0 %v273_v1  ;;  %v278_v6 = vld [vmem:[#allocation5 + $0x28] sm:$0xff]   ;;  %v279_v7 = vld [vmem:[#allocation5 + $0x30] sm:$0xff]   ;;  %v280_v8 = vld [vmem:[#allocation5 + $0x38] sm:$0xff]   ;;  %s213_s6 = sshll.u32 %s362_s1, 4  ;;  %s214_s6 = int_to_ptr.vmem [resolvable:$true] %s213_s6 }
  0x29   :  { %246 = vmatprep.subr.bf16.mxu0 %v360_v0  ;;  %v281_v9 = vld [vmem:[#allocation2] sm:$0xff]   ;;  %s328_s7 = scalar_lea.vmem %s214_s6, 256  ;;  %p333_p3 = scmp.lt.s32.totalorder %s214_s6, %s214_s6 }
  0x2a   :  { %p329_p2 = scmp.ne.s32.totalorder %s214_s6, %s328_s7  ;;  %p334_p4 = scmp.lt.s32.totalorder %s328_s7, %s328_s7 }
  0x2c   :  { %p335_p5 = por %p334_p4, %p333_p3 }
  0x2e   :  { %p336_p6 = pnand %p335_p5, %p329_p2 }
  0x30   :  { %247 = vmatpush3.bf16.xpose.msra.mxu0 %v274_v2 }
  0x31   :  { %248 = vmatprep.subr.bf16.mxu0 %v360_v0 }
  0x38   :  { %249 = vmatpush3.bf16.xpose.msra.mxu0 %v275_v3 }
  0x39   :  { %250 = vmatprep.subr.bf16.mxu0 %v360_v0 }
  0x40   :  { %251 = vmatpush3.bf16.xpose.msra.mxu0 %v276_v4 }
  0x41   :  { %252 = vmatprep.subr.bf16.mxu0 %v360_v0 }
  0x48   :  { %253 = vmatpush3.bf16.xpose.msra.mxu0 %v277_v5 }
  0x49   :  { %254 = vmatprep.subr.bf16.mxu0 %v360_v0 }
  0x50   :  { %255 = vmatpush3.bf16.xpose.msra.mxu0 %v278_v6 }
  0x51   :  { %256 = vmatprep.subr.bf16.mxu0 %v360_v0 }
  0x58   :  { %257 = vmatpush3.bf16.xpose.msra.mxu0 %v279_v7 }
  0x59   :  { %258 = vmatprep.subr.bf16.mxu0 %v360_v0 }
  0x60   :  { %259 = vmatpush3.bf16.xpose.msra.mxu0 %v280_v8 }
  0x67   :  { %261 = vmatmul.mubr.bf16.vlgmr.msra.gmra.mrb[0].mxu0 %v281_v9 }
 0x13a   :  { %v147_v10 = vpop.f32.mrb[0].mxu0 }
 0x13b   :  { %v262_v11 = vpop.f32.mrb[1].mxu0 }
 0x13c   :  { %v150_v12 = vpop.f32.mrb[2].mxu0 }
 0x13d   :  { %v175_v13 = vadd.f32 %v150_v12, %v147_v10  ;;  %v263_v14 = vpop.f32.mrb[3].mxu0 }
 0x13f   :  { %v176_v15 = vrot.slane %v175_v13, 4 }
 0x141   :  { %v177_v16 = vadd.f32 %v176_v15, %v175_v13 }
 0x143   :  { %v178_v17 = vrot.slane %v177_v16, 2 }
 0x145   :  { %v179_v18 = vadd.f32 %v178_v17, %v177_v16 }
 0x147   :  { %v180_v19 = vrot.slane %v179_v18, 1 }
 0x149   :  { %v181_v20 = vadd.f32 %v180_v19, %v179_v18 }
 0x14b   :  { %v182_v21 = vmul.f32 0.125, %v181_v20 }
 0x14d   :  { %v188_v22 = vsub.f32 %v147_v10, %v182_v21 }
 0x14f   :  { %v192_v23 = vmul.f32 %v188_v22, %v188_v22 }
 0x151   :  { %v195_v24 = vrot.slane %v192_v23, 4 }
 0x153   :  { %v196_v25 = vadd.f32 %v195_v24, %v192_v23 }
 0x155   :  { %v197_v26 = vrot.slane %v196_v25, 2 }
 0x157   :  { %v198_v27 = vadd.f32 %v197_v26, %v196_v25 }
 0x159   :  { %v199_v28 = vrot.slane %v198_v27, 1 }
 0x15b   :  { %v200_v29 = vadd.f32 %v199_v28, %v198_v27 }
 0x15d   :  { %v201_v30 = vmul.f32 0.125, %v200_v29 }
 0x15f   :  { %v202_v31 = vadd.f32 1e-05, %v201_v30 }
 0x161   :  { %282 = vrsqrt.f32 %v202_v31 }
 0x16b   :  { %v283_v32 = vpop.eup %282 }
 0x16c   :  { %v204_v33 = vmul.f32 %v283_v32, %v188_v22  ;;  %v205_v34 = vmul.f32 0.0, %v283_v32 }
 0x16e   :  { %207 = vst [vmem:[#allocation7 + $0x8] sm:$0xff] %v205_v34  ;;  %206 = vst [vmem:[#allocation7] sm:$0xff] %v204_v33 }
 0x16f   :  { %339 = shalt.err (!%p336_p6)
}
 0x170   :  { %s340_s10 = scalar_lea.hbm %s418_s2, 256 }
 0x171   :  { %p341_p7 = scmp.ne.s32.totalorder %s418_s2, %s340_s10  ;;  %p344_p8 = scmp.lt.u32.totalorder %s340_s10, %s418_s2 }
 0x173   :  { %p346_p9 = pnand %p344_p8, %p341_p7 }
 0x175   :  { %349 = shalt.err (!%p346_p9)
}
 0x176   :  { %s363_s15 = smov 128   ;;  %s364_s16 = smov 8  }
 0x177   :  { %219 = dma.vmem_to_hbm [thread:$0]  %s214_s6, 256, %s418_s2, [#allocation4], %s363_s15, %s363_s15, %s364_s16  }
 0x178   :  { %354 = dma.done.wait [#allocation4], 256  }
 0x179   :  { %355 = vsyncadd [#allocation4], 4294967040 }
 0x17a   :  { %223 = vsyncpa [#allocation3], 1 }
 0x17b   :  { %224 = vsyncpa [#allocation6], 1 }
 0x17c   :  { %225 = vsyncpa [#allocation4], 1 }

</bundles_post_ra>
